<compile_context>
chip_gen: v6e
topology: v6e:2x2x1
jax: 0.10.0
libtpu: 0.0.40
codegen_flags: <defaults>
</compile_context>

<pallas_src>
import functools
import math

import jax
import jax.numpy as jnp
from jax.experimental import pallas as pl
from jax.experimental.pallas import tpu as pltpu


def _round_up(a, b):
    return (a + b - 1) // b * b


def _pick_tile(dim, cap, candidates):
    """Pick a 128-multiple tile <= cap that divides the padded dim.

    Returns (tile, padded_dim). Avoids padding beyond the next 128 multiple.
    """
    d = _round_up(dim, 128)
    if d <= cap:
        return d, d
    for c in candidates:
        if c <= cap and d % c == 0:
            return c, d
    return 128, d


# ----------------------------------------------------------------------------
# mode 0/1: tiled linear  y = x @ W_t + b     (bf16 MXU feed, f32 accumulate)
# ----------------------------------------------------------------------------
def linear_kernel(x_ref, wt_ref, b_ref, o_ref, acc_ref):
    k = pl.program_id(2)

    @pl.when(k == 0)
    def _init():
        # Fold the bias into the accumulator init: finalize is then a pure cast.
        acc_ref[...] = jnp.broadcast_to(b_ref[...], acc_ref.shape)

    acc_ref[...] += jnp.dot(          # bf16 x bf16 -> f32 on the MXU
        x_ref[...], wt_ref[...], preferred_element_type=jnp.float32,
    )

    @pl.when(k == pl.num_programs(2) - 1)
    def _finalize():
        o_ref[...] = acc_ref[...].astype(o_ref.dtype)


@functools.partial(jax.jit, static_argnames=("tm", "tn", "tk", "o_out"))
def _linear_forward(x, wt_p, bias_p, *, tm, tn, tk, o_out):
    B, K = x.shape
    Kp, Op = wt_p.shape
    Bp = _round_up(B, tm)

    # Only x is touched per call: cast to bf16 (halves its DMA bytes) and pad.
    xp = x.astype(jnp.bfloat16)
    if (Bp, Kp) != (B, K):
        xp = jnp.pad(xp, ((0, Bp - B), (0, Kp - K)))

    grid = (Bp // tm, Op // tn, Kp // tk)
    cost = pl.CostEstimate(
        flops=2 * Bp * Op * Kp,
        transcendentals=0,
        bytes_accessed=2 * (Bp * Kp + Kp * Op) + 4 * (Op + Bp * Op),
    )

    yp = pl.pallas_call(
        linear_kernel,
        out_shape=jax.ShapeDtypeStruct((Bp, Op), x.dtype),
        grid=grid,
        in_specs=[
            pl.BlockSpec((tm, tk), lambda i, j, k: (i, k)),
            pl.BlockSpec((tk, tn), lambda i, j, k: (k, j)),
            pl.BlockSpec((1, tn), lambda i, j, k: (0, j)),
        ],
        out_specs=pl.BlockSpec((tm, tn), lambda i, j, k: (i, j)),
        scratch_shapes=[pltpu.VMEM((tm, tn), jnp.float32)],
        compiler_params=pltpu.CompilerParams(
            dimension_semantics=("parallel", "parallel", "arbitrary"),
            vmem_limit_bytes=32 * 1024 * 1024,   # safe on v5e/v6e/v7x
        ),
        cost_estimate=cost,
    )(xp, wt_p, bias_p)
    return yp[:B, :o_out]


# ----------------------------------------------------------------------------
# mode 2: simplemax  out[b,o] = max_k x[b,k]*W[o,k], idx[b,o] = argmax_k (...)
# ----------------------------------------------------------------------------
def simplemax_kernel(x_ref, wt_ref, val_ref, idx_ref, *, tk):
    kblk = pl.program_id(2)

    # Output blocks are resident across the (arbitrary) K grid axis: use them
    # directly as the running (max, argmax) accumulators (no scratch copies).
    @pl.when(kblk == 0)
    def _init():
        val_ref[...] = jnp.full_like(val_ref, -jnp.inf)
        idx_ref[...] = jnp.zeros_like(idx_ref)

    x = x_ref[...]                     # (tm, tk) f32 -- a handful of vregs
    k0 = kblk * tk
    maxv = val_ref[...]
    idx = idx_ref[...]
    # Statically unrolled K stream: per k, one (tm, tn) outer-product slab,
    # pure VPU mul/compare/select.  No per-k padding mask: padded K columns of
    # x are NaN, and NaN products never win a strict '>'.  Strict '>' also
    # preserves first-index tie-breaking (matches torch.max / jnp.argmax).
    for kk in range(tk):
        wk = wt_ref[kk:kk + 1, :]                 # (1, tn) weight row
        c = x[:, kk:kk + 1] * wk                  # (tm, tn)
        better = c > maxv
        maxv = jnp.where(better, c, maxv)
        idx = jnp.where(better, k0 + kk, idx)
    val_ref[...] = maxv
    idx_ref[...] = idx


@functools.partial(jax.jit, static_argnames=("tm", "tn", "tk", "o_out"))
def _simplemax_forward(x, wt_p, *, tm, tn, tk, o_out):
    B, K = x.shape
    Kp, Op = wt_p.shape
    Bp = _round_up(B, tm)

    xp = x
    if Kp > K:
        # NaN K-padding: NaN*w never beats a strict '>' so padded columns can
        # never be selected -- removes the per-k mask from the inner loop.
        xp = jnp.pad(xp, ((0, 0), (0, Kp - K)), constant_values=float("nan"))
    if Bp > B:
        xp = jnp.pad(xp, ((0, Bp - B), (0, 0)))

    grid = (Bp // tm, Op // tn, Kp // tk)
    kern = functools.partial(simplemax_kernel, tk=tk)

    vp, ip = pl.pallas_call(
        kern,
        out_shape=(
            jax.ShapeDtypeStruct((Bp, Op), x.dtype),
            jax.ShapeDtypeStruct((Bp, Op), jnp.int32),
        ),
        grid=grid,
        in_specs=[
            pl.BlockSpec((tm, tk), lambda i, j, k: (i, k)),
            pl.BlockSpec((tk, tn), lambda i, j, k: (k, j)),
        ],
        out_specs=(
            pl.BlockSpec((tm, tn), lambda i, j, k: (i, j)),
            pl.BlockSpec((tm, tn), lambda i, j, k: (i, j)),
        ),
        compiler_params=pltpu.CompilerParams(
            dimension_semantics=("parallel", "parallel", "arbitrary"),
            vmem_limit_bytes=32 * 1024 * 1024,
        ),
    )(xp, wt_p)
    return vp[:B, :o_out], ip[:B, :o_out]


# ----------------------------------------------------------------------------
# Module mirror
# ----------------------------------------------------------------------------
class MyLinearPallas:
    """Mirror of my_Linear (modes 0/1 standard linear; mode 2 simplemax)."""

    def __init__(self, in_features, out_features, key, bias=True):
        self.in_features = in_features
        self.out_features = out_features
        kw, kb = jax.random.split(key)
        # kaiming_uniform_(a=sqrt(5)) on (out, in) => U(-1/sqrt(fan_in), 1/sqrt(fan_in))
        bound = 1.0 / math.sqrt(in_features)
        self.weight = jax.random.uniform(
            kw, (out_features, in_features), jnp.float32, -bound, bound)
        weight_t = jnp.asarray(self.weight.T)                    # (K, O)
        if bias:
            self.bias = jax.random.uniform(
                kb, (out_features,), jnp.float32, -bound, bound)
        else:
            self.bias = jnp.zeros((out_features,), jnp.float32)

        # ---- modes 0/1: pad + cast the weight/bias ONCE (bf16 MXU feed) ----
        self._tn_lin, op_lin = _pick_tile(
            out_features, 1024, (1024, 512, 384, 256, 128))
        self._tk_lin, kp_lin = _pick_tile(
            in_features, 2048, (2048, 1024, 512, 384, 256, 128))
        self._wt_lin = jnp.pad(
            weight_t, ((0, kp_lin - in_features), (0, op_lin - out_features))
        ).astype(jnp.bfloat16)
        self._bias_lin = jnp.pad(
            self.bias.reshape(1, out_features),
            ((0, 0), (0, op_lin - out_features))).astype(jnp.float32)

        # ---- mode 2: exact f32 weight, padded ONCE (VPU max/argmax path) ----
        self._tn_sm, op_sm = _pick_tile(out_features, 256, (256, 128))
        self._tk_sm = 128
        kp_sm = _round_up(in_features, 128)
        self._wt_sm = jnp.pad(
            weight_t, ((0, kp_sm - in_features), (0, op_sm - out_features)))

        self._mode = 0
        self._value = None
        self._index = None

    def setMode(self, m):
        self._mode = m

    def forward(self, x):
        B = x.shape[0]
        if self._mode == 2:
            tm = min(32, _round_up(B, 8))
            value, index = _simplemax_forward(
                x, self._wt_sm, tm=tm, tn=self._tn_sm, tk=self._tk_sm,
                o_out=self.out_features)
            self._value = value
            self._index = index
            return value

        # mode 0 and mode 1 are identical in the reference module
        tm = min(256, _round_up(B, 8))
        tn, tk = self._tn_lin, self._tk_lin
        bp = _round_up(B, tm)
        op = self._wt_lin.shape[1]
        # Widen the parallel grid (>=2 blocks) so both v7x TensorCores get
        # work on small/medium problems; no-op when the grid is already wide.
        if (bp // tm) * (op // tn) < 2:
            if tn % 256 == 0:
                tn //= 2
            elif tm % 16 == 0:
                tm //= 2
        return _linear_forward(x, self._wt_lin, self._bias_lin,
                               tm=tm, tn=tn, tk=tk, o_out=self.out_features)

    def getValue(self, pos):
        return self._value.flatten()[pos]

    def getIndex(self, pos):
        return int(self._index.flatten()[pos])

    def getOutShape(self):
        return self._value.shape

    # TODO(synk): my_Linear.backward() is host-side bookkeeping over the stored
    # (_value, _index) argmax-backtrace table (list concat + prints), not a
    # tensor hot path; intentionally not implemented as a Pallas kernel.


# ----------------------------------------------------------------------------
# Main
# ----------------------------------------------------------------------------
if __name__ == "__main__":
    base_key = jax.random.PRNGKey(0)

    # (batch, in_features, out_features): one tiny case, one multi-K-block case.
    cases = [(4, 32, 16), (8, 640, 272)]
    for ci, (batch, in_features, out_features) in enumerate(cases):
        k_in, k_mod = jax.random.split(jax.random.fold_in(base_key, ci))
        x = jax.random.normal(k_in, (batch, in_features), jnp.float32)
        layer = MyLinearPallas(in_features, out_features, k_mod, bias=True)

        # ---- mode 0 (default forward): y = x @ W.T + b  (bf16 MXU feed) ----
        layer.setMode(0)
        y = layer.forward(x)
        jax.block_until_ready(y)
        y_ref = x @ layer.weight.T + layer.bias
        assert y.shape == (batch, out_features)
        assert jnp.allclose(y, y_ref, atol=2e-2, rtol=2e-2), f"mode-0 mismatch case {ci}"

        # ---- mode 2 (simplemax): max_k x[b,k]*W[o,k] + argmax index ----
        layer.setMode(2)
        v = layer.forward(x)
        jax.block_until_ready(v)
        contrib_ref = x[:, None, :] * layer.weight[None, :, :]
        v_ref = jnp.max(contrib_ref, axis=-1)
        i_ref = jnp.argmax(contrib_ref, axis=-1).astype(jnp.int32)
        assert v.shape == (batch, out_features)
        assert jnp.allclose(v, v_ref, atol=1e-5, rtol=1e-5), f"mode-2 value mismatch case {ci}"
        assert jnp.array_equal(layer._index, i_ref), f"mode-2 index mismatch case {ci}"

    print("KERNEL_OK")
</pallas_src>

<mosaic_0001>
module attributes {stable_mosaic.version = 11 : i64} {
  func.func @linear_kernel(%arg0: i32, %arg1: i32, %arg2: i32, %arg3: memref<8x128xbf16, #tpu.memory_space<vmem>>, %arg4: memref<128x128xbf16, #tpu.memory_space<vmem>>, %arg5: memref<1x128xf32, #tpu.memory_space<vmem>>, %arg6: memref<8x128xf32, #tpu.memory_space<vmem>>, %arg7: memref<8x128xf32, #tpu.memory_space<vmem>>) attributes {dimension_semantics = [#tpu.dimension_semantics<parallel>, #tpu.dimension_semantics<parallel>, #tpu.dimension_semantics<arbitrary>], iteration_bounds = array<i64: 1, 1, 1>, scalar_prefetch = 0 : i64, scratch_operands = 1 : i64, tpu.core_type = #tpu.core_type<tc>, window_params = [{transform_indices = @transform_0, window_bounds = array<i64: 8, 128>}, {transform_indices = @transform_1, window_bounds = array<i64: 128, 128>}, {transform_indices = @transform_2, window_bounds = array<i64: 1, 128>}, {transform_indices = @transform_3, window_bounds = array<i64: 8, 128>}]} {
    %c0_i32 = arith.constant 0 : i32
    %0 = arith.cmpi eq, %arg2, %c0_i32 : i32
    %1 = arith.extui %0 : i1 to i32
    %c0_i32_0 = arith.constant 0 : i32
    %2 = arith.cmpi ne, %1, %c0_i32_0 : i32
    scf.if %2 {
      %c0_10 = arith.constant 0 : index
      %c0_11 = arith.constant 0 : index
      %12 = vector.load %arg5[%c0_10, %c0_11] : memref<1x128xf32, #tpu.memory_space<vmem>>, vector<1x128xf32>
      %13 = vector.shape_cast %12 : vector<1x128xf32> to vector<1x128xf32>
      %14 = vector.broadcast %13 : vector<1x128xf32> to vector<8x128xf32>
      %c0_12 = arith.constant 0 : index
      %c0_13 = arith.constant 0 : index
      %15 = vector.load %arg7[%c0_12, %c0_13] : memref<8x128xf32, #tpu.memory_space<vmem>>, vector<8x128xf32>
      tpu.vector_store %arg7[%c0_12, %c0_13], %14 {strides = array<i32>} : memref<8x128xf32, #tpu.memory_space<vmem>>, vector<8x128xf32>,
    } else {
    }
    %c0 = arith.constant 0 : index
    %c0_1 = arith.constant 0 : index
    %3 = vector.load %arg7[%c0, %c0_1] : memref<8x128xf32, #tpu.memory_space<vmem>>, vector<8x128xf32>
    %c0_2 = arith.constant 0 : index
    %c0_3 = arith.constant 0 : index
    %4 = vector.load %arg3[%c0_2, %c0_3] : memref<8x128xbf16, #tpu.memory_space<vmem>>, vector<8x128xbf16>
    %c0_4 = arith.constant 0 : index
    %c0_5 = arith.constant 0 : index
    %5 = vector.load %arg4[%c0_4, %c0_5] : memref<128x128xbf16, #tpu.memory_space<vmem>>, vector<128x128xbf16>
    %cst = arith.constant dense<0.000000e+00> : vector<8x128xf32>
    %6 = tpu.matmul %4, %5, %cst {dimension_numbers = #tpu.dot_dimension_numbers<[1], [0], [0], [1], [0, 0, 1, 1], [], []>} : vector<8x128xbf16>, vector<128x128xbf16>, vector<8x128xf32> -> vector<8x128xf32>
    %7 = arith.addf %3, %6 : vector<8x128xf32>
    %c0_6 = arith.constant 0 : index
    %c0_7 = arith.constant 0 : index
    %8 = vector.load %arg7[%c0_6, %c0_7] : memref<8x128xf32, #tpu.memory_space<vmem>>, vector<8x128xf32>
    tpu.vector_store %arg7[%c0_6, %c0_7], %7 {strides = array<i32>} : memref<8x128xf32, #tpu.memory_space<vmem>>, vector<8x128xf32>,
    %c0_i32_8 = arith.constant 0 : i32
    %9 = arith.cmpi eq, %arg2, %c0_i32_8 : i32
    %10 = arith.extui %9 : i1 to i32
    %c0_i32_9 = arith.constant 0 : i32
    %11 = arith.cmpi ne, %10, %c0_i32_9 : i32
    scf.if %11 {
      %c0_10 = arith.constant 0 : index
      %c0_11 = arith.constant 0 : index
      %12 = vector.load %arg7[%c0_10, %c0_11] : memref<8x128xf32, #tpu.memory_space<vmem>>, vector<8x128xf32>
      %c0_12 = arith.constant 0 : index
      %c0_13 = arith.constant 0 : index
      %13 = vector.load %arg6[%c0_12, %c0_13] : memref<8x128xf32, #tpu.memory_space<vmem>>, vector<8x128xf32>
      tpu.vector_store %arg6[%c0_12, %c0_13], %12 {strides = array<i32>} : memref<8x128xf32, #tpu.memory_space<vmem>>, vector<8x128xf32>,
    } else {
    }
    return
  }
  func.func @transform_0(%arg0: i32, %arg1: i32, %arg2: i32) -> (i32, i32) {
    %c0_i32 = arith.constant 0 : i32
    return %arg0, %arg2 : i32, i32
  }
  func.func @transform_1(%arg0: i32, %arg1: i32, %arg2: i32) -> (i32, i32) {
    %c0_i32 = arith.constant 0 : i32
    return %arg2, %arg1 : i32, i32
  }
  func.func @transform_2(%arg0: i32, %arg1: i32, %arg2: i32) -> (i32, i32) {
    %c0_i32 = arith.constant 0 : i32
    %c0_i32_0 = arith.constant 0 : i32
    return %c0_i32, %arg1 : i32, i32
  }
  func.func @transform_3(%arg0: i32, %arg1: i32, %arg2: i32) -> (i32, i32) {
    %c0_i32 = arith.constant 0 : i32
    return %arg0, %arg1 : i32, i32
  }
}

</mosaic_0001>

<bundles_post_ra>
// kernel: _linear_forward.1
= control target key start
LH: loop header
LB: loop body
LE: loop exit
PB: predicated region body
PF: predicated region fallthrough
CT: control target
= control target key end

     0   :  { %8 = vsyncpa [#allocation4], 0  ;;  %s232_s12 = smov [#allocation3]   ;;  %s269_s0 = inlined_call_operand.vmem [shape: bf16[8,128], index: 0, kind: input, shape index: {}]   ;;  %s270_s1 = inlined_call_operand.hbm [shape: bf16[128,128], index: 1, kind: input, shape index: {}]   ;;  %s271_s2 = inlined_call_operand.vmem [shape: f32[1,128], index: 2, kind: input, shape index: {}]   ;;  %s272_s3 = inlined_call_operand.vmem [shape: f32[8,128], index: 3, kind: output, shape index: {}]  }
   0x1   :  { %s16_s13 = sshll.u32 %s232_s12, 4  ;;  %s17_s13 = int_to_ptr.vmem [resolvable:$true] %s16_s13 }
   0x2   :  { %s218_s14 = scalar_lea.vmem %s17_s13, 1024  ;;  %p223_p1 = scmp.lt.s32.totalorder %s17_s13, %s17_s13 }
   0x3   :  { %p219_p0 = scmp.ne.s32.totalorder %s17_s13, %s218_s14  ;;  %p224_p2 = scmp.lt.s32.totalorder %s218_s14, %s218_s14 }
   0x5   :  { %p225_p3 = por %p224_p2, %p223_p1 }
   0x7   :  { %p226_p4 = pnand %p225_p3, %p219_p0 }
   0x9   :  { %229 = shalt.err (!%p226_p4)
}
   0xa   :  { %s233_s15 = smov 64   ;;  %s234_s16 = smov 4  }
   0xb   :  { %22 = dma.hbm_to_vmem [thread:$0]  %s270_s1, 1024, %s17_s13, [#allocation4], %s233_s15, %s233_s15, %s234_s16  }
   0xc   :  { %230 = dma.done.wait [#allocation4], 1024  }
   0xd   :  { %231 = vsyncadd [#allocation4], 4294966272  ;;  %v235_v0 = vmov 0.0   ;;  %vm236_vm0 = vmmov 0   ;;  %v202_v1 = vld [vmem:[#allocation3 + $0x38] sm:$0xff]   ;;  %v203_v2 = vld [vmem:[#allocation3 + $0x30] sm:$0xff]  }
   0xe   :  { %177 = vmatprep.subr.bf16.mxu0 %v235_v0  ;;  %193 = vmatprep.mubr.msk.bf16.mxu0 %vm236_vm0, %v235_v0  ;;  %v204_v3 = vld [vmem:[#allocation3 + $0x28] sm:$0xff]   ;;  %v205_v4 = vld [vmem:[#allocation3 + $0x20] sm:$0xff]   ;;  %v206_v5 = vld [vmem:[#allocation3 + $0x18] sm:$0xff]  }
   0xf   :  { %178 = vmatpush3.bf16.msra.mxu0 %v202_v1  ;;  %v207_v6 = vld [vmem:[#allocation3 + $0x10] sm:$0xff]   ;;  %v208_v7 = vld [vmem:[#allocation3 + $0x8] sm:$0xff]   ;;  %v209_v8 = vld [vmem:[#allocation3] sm:$0xff]  }
  0x10   :  { %179 = vmatprep.subr.bf16.mxu0 %v235_v0  ;;  %v42_v9 = vld [vmem:[%s269_s0] sm:$0xf] }
  0x11   :  { %v159_v10 = vld [vmem:[%s271_s2] ss:$0 sm:$0xff] }
  0x13   :  { %180 = vmatpush3.bf16.msra.mxu0 %v203_v2 }
  0x14   :  { %181 = vmatprep.subr.bf16.mxu0 %v235_v0 }
  0x17   :  { %182 = vmatpush3.bf16.msra.mxu0 %v204_v3 }
  0x18   :  { %183 = vmatprep.subr.bf16.mxu0 %v235_v0 }
  0x1b   :  { %184 = vmatpush3.bf16.msra.mxu0 %v205_v4 }
  0x1c   :  { %185 = vmatprep.subr.bf16.mxu0 %v235_v0 }
  0x1f   :  { %186 = vmatpush3.bf16.msra.mxu0 %v206_v5 }
  0x20   :  { %187 = vmatprep.subr.bf16.mxu0 %v235_v0 }
  0x23   :  { %188 = vmatpush3.bf16.msra.mxu0 %v207_v6 }
  0x24   :  { %189 = vmatprep.subr.bf16.mxu0 %v235_v0 }
  0x27   :  { %190 = vmatpush3.bf16.msra.mxu0 %v208_v7 }
  0x28   :  { %191 = vmatprep.subr.bf16.mxu0 %v235_v0 }
  0x2b   :  { %192 = vmatpush3.bf16.msra.mxu0 %v209_v8 }
  0x2e   :  { %194 = vmatmul.mubr.bf16.vlgmr.msra.gmra.mxu0 %v42_v9 }
  0xee   :  { %v141_v11 = vpop.f32.mrf.mxu0 }
  0xef   :  { %v147_v12 = vadd.f32 %v159_v10, %v141_v11 }
  0xf0   :  { %v195_v13 = vpop.f32.mrf.mxu0 }
  0xf1   :  { %153 = vst [vmem:[%s272_s3] sm:$0xff] %v147_v12 }
  0xf2   :  { %v144_v14 = vpop.f32.mrf.mxu0 }
  0xf4   :  { %v196_v15 = vpop.f32.mrf.mxu0 }
  0xf5   :  { %158 = vsyncpa [#allocation4], 1 }

</bundles_post_ra>
